<compile_context>
chip_gen: v7x
topology: tpu7x:2x2x1
jax: 0.10.0
libtpu: 0.0.40
codegen_flags: <defaults>
</compile_context>

<pallas_src>
import jax
import jax.numpy as jnp
from jax.experimental import pallas as pl
from jax.experimental.pallas import tpu as pltpu


def pa_kernel(w1_ref, b1_ref, w2_ref, b2_ref, x_ref, o_ref):
    """One grid step: bN images x one lane-dense pixel tile.

    w1_ref: (C8, C)    resident conv1 weight (x dtype, feeds the MXU directly)
    b1_ref: (C8, 1)    resident conv1 bias   (f32)
    w2_ref: (1, C8)    resident conv2 weight (f32)
    b2_ref: (1, 1)     resident conv2 bias   (f32)
    x_ref : (bN, C, T) streamed NCHW-native slab (C on sublanes, pixels on lanes)
    o_ref : (bN, C, T)
    """
    w1 = w1_ref[...]
    b1 = b1_ref[...].astype(jnp.float32)
    w2 = w2_ref[...].astype(jnp.float32)
    b2 = b2_ref[0, 0].astype(jnp.float32)
    bN = x_ref.shape[0]

    # Static (fully unrolled, bN is small) loop over the images packed in this
    # block keeps every dot a plain 2-D MXU matmul — no batched-dot transposes
    # or sublane relayouts of the intermediate.
    for b in range(bN):
        xb = x_ref[b]                                             # (C, T), native dtype, no copy
        # conv1 (1x1): (C8, C) @ (C, T) on the MXU with f32 accumulate.
        h = jnp.dot(w1, xb, preferred_element_type=jnp.float32)   # (C8, T)
        h = jnp.maximum(h + b1, 0.0)                              # bias + ReLU
        # conv2 (1x1 -> 1 channel) as a second (tiny, M=1) MXU dot.
        s = jnp.dot(w2, h, preferred_element_type=jnp.float32)    # (1, T)
        # Exact sigmoid (EUP exp); cost is on 1/C of the elements, negligible in a
        # mem-bound kernel, and keeps f32 bit-accuracy vs. the reference.
        y = jax.nn.sigmoid(s + b2)                                # (1, T)
        # Pixel attention: broadcast y over all C sublanes; multiply in native dtype.
        o_ref[b] = (xb * y.astype(xb.dtype)).astype(o_ref.dtype)


def _pick_tiles(N, C, hw_padded, itemsize,
                target_block_bytes=2 << 20, max_batch_per_block=8):
    """Pick (bN, tile_hw) so one streamed block is ~1-2 MiB.

    With double-buffered in+out that is at most ~8 MiB of pipeline buffers —
    comfortably under the scoped-VMEM defaults on v5e (16 MiB) and v6e/v7x
    (32 MiB), while being large enough to hit the measured 85%+ HBM-roofline
    regime. (For extreme C where even a 128-lane slab exceeds the target, the
    tile degrades gracefully to the 128-lane minimum.)
    """
    # Largest multiple of 128 dividing hw_padded whose (C, tile) slab fits the budget.
    tile_hw = 128
    t = 128
    while t <= hw_padded:
        if hw_padded % t == 0 and C * t * itemsize <= target_block_bytes:
            tile_hw = t
        t += 128

    # If a whole image fits in one tile, pack several images per block so tiny
    # feature maps are not dominated by the ~0.35 us per-grid-step overhead.
    bN = 1
    if tile_hw == hw_padded:
        per_image = C * hw_padded * itemsize
        bN = int(min(N, max_batch_per_block,
                     max(1, target_block_bytes // max(per_image, 1))))
        while N % bN:            # must divide N exactly
            bN -= 1
    return bN, tile_hw


def pa_layer(x_nchw, w1, b1, w2, b2):
    """PALayer forward.
    x_nchw: (N, C, H, W); w1: (C//8, C, 1, 1); b1: (C//8,); w2: (1, C//8, 1, 1); b2: (1,)."""
    N, C, H, W = x_nchw.shape
    C8 = w1.shape[0]
    HW = H * W
    itemsize = jnp.dtype(x_nchw.dtype).itemsize

    # NCHW-native: collapse H,W (free reshape) and pad pixels to a multiple of 128
    # so every streamed block is lane-dense (unmasked full-width stores).
    hw_padded = ((HW + 127) // 128) * 128
    x3d = x_nchw.reshape(N, C, HW)
    if hw_padded != HW:
        # Zero padding is semantically safe: out = x * y, so padded pixels stay 0
        # and are sliced away below.
        # TODO(synk): a masked last tile would avoid this extra HBM pad pass.
        x3d = jnp.pad(x3d, ((0, 0), (0, 0), (0, hw_padded - HW)))

    bN, tile_hw = _pick_tiles(N, C, hw_padded, itemsize)
    grid = (N // bN, hw_padded // tile_hw)

    # Tiny resident param inputs (DMA'd once, constant index_maps, no per-step slicing).
    w1_mat = w1.reshape(C8, C).astype(x_nchw.dtype)   # matmul operand in the model dtype
    b1_col = b1.reshape(C8, 1).astype(jnp.float32)
    w2_row = w2.reshape(1, C8).astype(jnp.float32)
    b2_sc = b2.reshape(1, 1).astype(jnp.float32)

    flops = N * HW * (2 * C * C8 + 2 * C8 + C)
    bytes_accessed = 2 * N * C * HW * itemsize + (C8 * C + 2 * C8 + 2) * 4

    out3d = pl.pallas_call(
        pa_kernel,
        out_shape=jax.ShapeDtypeStruct((N, C, hw_padded), x_nchw.dtype),
        grid_spec=pltpu.PrefetchScalarGridSpec(
            num_scalar_prefetch=0,
            grid=grid,
            in_specs=[
                pl.BlockSpec((C8, C), lambda n, t: (0, 0)),               # w1 (resident)
                pl.BlockSpec((C8, 1), lambda n, t: (0, 0)),               # b1 (resident)
                pl.BlockSpec((1, C8), lambda n, t: (0, 0)),               # w2 (resident)
                pl.BlockSpec((1, 1), lambda n, t: (0, 0)),                # b2 (resident)
                pl.BlockSpec((bN, C, tile_hw), lambda n, t: (n, 0, t)),   # x (streamed)
            ],
            out_specs=pl.BlockSpec((bN, C, tile_hw), lambda n, t: (n, 0, t)),
        ),
        compiler_params=pltpu.CompilerParams(
            dimension_semantics=("parallel", "parallel")),
        cost_estimate=pl.CostEstimate(
            flops=flops, transcendentals=N * HW, bytes_accessed=bytes_accessed),
    )(w1_mat, b1_col, w2_row, b2_sc, x3d)

    out3d = out3d[:, :, :HW] if hw_padded != HW else out3d
    return out3d.reshape(N, C, H, W)


def pa_layer_ref(x_nchw, w1, b1, w2, b2):
    """Plain-JAX reference of the PyTorch forward (NCHW 1x1 convs)."""
    C8 = w1.shape[0]
    x = x_nchw.astype(jnp.float32)
    h = jnp.einsum("nchw,oc->nohw", x, w1.reshape(C8, -1)) + b1.reshape(1, C8, 1, 1)
    h = jnp.maximum(h, 0.0)
    s = jnp.einsum("nchw,oc->nohw", h, w2.reshape(1, C8)) + b2.reshape(1, 1, 1, 1)
    y = jax.nn.sigmoid(s)
    return (x * y).astype(x_nchw.dtype)


if __name__ == "__main__":
    key = jax.random.PRNGKey(0)
    N, C, H, W = 2, 32, 16, 16       # channel must be >= 8 (conv1 outputs C//8)
    C8 = C // 8

    kx, kw1, kb1, kw2, kb2 = jax.random.split(key, 5)
    x = jax.random.normal(kx, (N, C, H, W), dtype=jnp.float32)
    w1 = jax.random.normal(kw1, (C8, C, 1, 1), dtype=jnp.float32) * 0.1
    b1 = jax.random.normal(kb1, (C8,), dtype=jnp.float32) * 0.1
    w2 = jax.random.normal(kw2, (1, C8, 1, 1), dtype=jnp.float32) * 0.1
    b2 = jax.random.normal(kb2, (1,), dtype=jnp.float32) * 0.1

    out = jax.block_until_ready(pa_layer(x, w1, b1, w2, b2))
    ref = jax.block_until_ready(pa_layer_ref(x, w1, b1, w2, b2))

    assert out.shape == x.shape and out.dtype == x.dtype
    assert jnp.allclose(out, ref, atol=1e-5, rtol=1e-5), "mismatch vs reference"
    print("KERNEL_OK")
</pallas_src>

<mosaic_0001>
module attributes {stable_mosaic.version = 11 : i64} {
  func.func @pa_kernel(%arg0: i32, %arg1: i32, %arg2: memref<4x32xf32, #tpu.memory_space<vmem>>, %arg3: memref<4x1xf32, #tpu.memory_space<vmem>>, %arg4: memref<1x4xf32, #tpu.memory_space<vmem>>, %arg5: memref<1x1xf32, #tpu.memory_space<vmem>>, %arg6: memref<2x32x256xf32, #tpu.memory_space<vmem>>, %arg7: memref<2x32x256xf32, #tpu.memory_space<vmem>>) attributes {dimension_semantics = [#tpu.dimension_semantics<parallel>, #tpu.dimension_semantics<parallel>], iteration_bounds = array<i64: 1, 1>, scalar_prefetch = 0 : i64, scratch_operands = 0 : i64, tpu.core_type = #tpu.core_type<tc>, window_params = [{pipeline_mode = #tpu.pipeline_mode<synchronous>, transform_indices = @transform_0, window_bounds = array<i64: 4, 32>}, {pipeline_mode = #tpu.pipeline_mode<synchronous>, transform_indices = @transform_1, window_bounds = array<i64: 4, 1>}, {pipeline_mode = #tpu.pipeline_mode<synchronous>, transform_indices = @transform_2, window_bounds = array<i64: 1, 4>}, {pipeline_mode = #tpu.pipeline_mode<synchronous>, transform_indices = @transform_3, window_bounds = array<i64: 1, 1>}, {transform_indices = @transform_4, window_bounds = array<i64: 2, 32, 256>}, {transform_indices = @transform_5, window_bounds = array<i64: 2, 32, 256>}]} {
    %c0 = arith.constant 0 : index
    %c0_0 = arith.constant 0 : index
    %0 = vector.load %arg2[%c0, %c0_0] : memref<4x32xf32, #tpu.memory_space<vmem>>, vector<4x32xf32>
    %c0_1 = arith.constant 0 : index
    %c0_2 = arith.constant 0 : index
    %1 = vector.load %arg3[%c0_1, %c0_2] : memref<4x1xf32, #tpu.memory_space<vmem>>, vector<4x1xf32>
    %c0_3 = arith.constant 0 : index
    %c0_4 = arith.constant 0 : index
    %2 = vector.load %arg4[%c0_3, %c0_4] : memref<1x4xf32, #tpu.memory_space<vmem>>, vector<1x4xf32>
    %c0_5 = arith.constant 0 : index
    %c0_6 = arith.constant 0 : index
    %3 = vector.load %arg5[%c0_5, %c0_6] : memref<1x1xf32, #tpu.memory_space<vmem>>, vector<1x1xf32>
    %4 = vector.extract %3[0, 0] : f32 from vector<1x1xf32>
    %c0_7 = arith.constant 0 : index
    %c0_8 = arith.constant 0 : index
    %c0_9 = arith.constant 0 : index
    %5 = vector.load %arg6[%c0_7, %c0_8, %c0_9] : memref<2x32x256xf32, #tpu.memory_space<vmem>>, vector<1x32x256xf32>
    %6 = vector.shape_cast %5 : vector<1x32x256xf32> to vector<32x256xf32>
    %cst = arith.constant dense<0.000000e+00> : vector<4x256xf32>
    %7 = tpu.matmul %0, %6, %cst {dimension_numbers = #tpu.dot_dimension_numbers<[1], [0], [0], [1], [0, 0, 1, 1], [], []>} : vector<4x32xf32>, vector<32x256xf32>, vector<4x256xf32> -> vector<4x256xf32>
    %8 = vector.broadcast %1 : vector<4x1xf32> to vector<4x256xf32>
    %9 = arith.addf %7, %8 : vector<4x256xf32>
    %cst_10 = arith.constant 0.000000e+00 : f32
    %10 = vector.broadcast %cst_10 : f32 to vector<4x256xf32>
    %11 = arith.maximumf %9, %10 : vector<4x256xf32>
    %cst_11 = arith.constant dense<0.000000e+00> : vector<1x256xf32>
    %12 = tpu.matmul %2, %11, %cst_11 {dimension_numbers = #tpu.dot_dimension_numbers<[1], [0], [0], [1], [0, 0, 1, 1], [], []>} : vector<1x4xf32>, vector<4x256xf32>, vector<1x256xf32> -> vector<1x256xf32>
    %13 = vector.broadcast %4 : f32 to vector<1x256xf32>
    %14 = arith.addf %12, %13 : vector<1x256xf32>
    %15 = arith.negf %14 : vector<1x256xf32>
    %16 = math.exp %15 : vector<1x256xf32>
    %cst_12 = arith.constant 1.000000e+00 : f32
    %17 = vector.broadcast %cst_12 : f32 to vector<1x256xf32>
    %18 = arith.addf %17, %16 : vector<1x256xf32>
    %19 = arith.divf %17, %18 : vector<1x256xf32>
    %20 = vector.broadcast %19 : vector<1x256xf32> to vector<32x256xf32>
    %21 = arith.mulf %6, %20 : vector<32x256xf32>
    %c0_13 = arith.constant 0 : index
    %c0_14 = arith.constant 0 : index
    %c0_15 = arith.constant 0 : index
    %22 = vector.load %arg7[%c0_13, %c0_14, %c0_15] : memref<2x32x256xf32, #tpu.memory_space<vmem>>, vector<1x32x256xf32>
    %23 = vector.shape_cast %22 : vector<1x32x256xf32> to vector<32x256xf32>
    %24 = vector.shape_cast %21 : vector<32x256xf32> to vector<1x32x256xf32>
    tpu.vector_store %arg7[%c0_13, %c0_14, %c0_15], %24 {strides = array<i32>} : memref<2x32x256xf32, #tpu.memory_space<vmem>>, vector<1x32x256xf32>,
    %c1 = arith.constant 1 : index
    %c0_16 = arith.constant 0 : index
    %c0_17 = arith.constant 0 : index
    %25 = vector.load %arg6[%c1, %c0_16, %c0_17] : memref<2x32x256xf32, #tpu.memory_space<vmem>>, vector<1x32x256xf32>
    %26 = vector.shape_cast %25 : vector<1x32x256xf32> to vector<32x256xf32>
    %cst_18 = arith.constant dense<0.000000e+00> : vector<4x256xf32>
    %27 = tpu.matmul %0, %26, %cst_18 {dimension_numbers = #tpu.dot_dimension_numbers<[1], [0], [0], [1], [0, 0, 1, 1], [], []>} : vector<4x32xf32>, vector<32x256xf32>, vector<4x256xf32> -> vector<4x256xf32>
    %28 = vector.broadcast %1 : vector<4x1xf32> to vector<4x256xf32>
    %29 = arith.addf %27, %28 : vector<4x256xf32>
    %cst_19 = arith.constant 0.000000e+00 : f32
    %30 = vector.broadcast %cst_19 : f32 to vector<4x256xf32>
    %31 = arith.maximumf %29, %30 : vector<4x256xf32>
    %cst_20 = arith.constant dense<0.000000e+00> : vector<1x256xf32>
    %32 = tpu.matmul %2, %31, %cst_20 {dimension_numbers = #tpu.dot_dimension_numbers<[1], [0], [0], [1], [0, 0, 1, 1], [], []>} : vector<1x4xf32>, vector<4x256xf32>, vector<1x256xf32> -> vector<1x256xf32>
    %33 = vector.broadcast %4 : f32 to vector<1x256xf32>
    %34 = arith.addf %32, %33 : vector<1x256xf32>
    %35 = arith.negf %34 : vector<1x256xf32>
    %36 = math.exp %35 : vector<1x256xf32>
    %cst_21 = arith.constant 1.000000e+00 : f32
    %37 = vector.broadcast %cst_21 : f32 to vector<1x256xf32>
    %38 = arith.addf %37, %36 : vector<1x256xf32>
    %39 = arith.divf %37, %38 : vector<1x256xf32>
    %40 = vector.broadcast %39 : vector<1x256xf32> to vector<32x256xf32>
    %41 = arith.mulf %26, %40 : vector<32x256xf32>
    %c1_22 = arith.constant 1 : index
    %c0_23 = arith.constant 0 : index
    %c0_24 = arith.constant 0 : index
    %42 = vector.load %arg7[%c1_22, %c0_23, %c0_24] : memref<2x32x256xf32, #tpu.memory_space<vmem>>, vector<1x32x256xf32>
    %43 = vector.shape_cast %42 : vector<1x32x256xf32> to vector<32x256xf32>
    %44 = vector.shape_cast %41 : vector<32x256xf32> to vector<1x32x256xf32>
    tpu.vector_store %arg7[%c1_22, %c0_23, %c0_24], %44 {strides = array<i32>} : memref<2x32x256xf32, #tpu.memory_space<vmem>>, vector<1x32x256xf32>,
    return
  }
  func.func @transform_0(%arg0: i32, %arg1: i32) -> (i32, i32) {
    %c0_i32 = arith.constant 0 : i32
    %c0_i32_0 = arith.constant 0 : i32
    %c0_i32_1 = arith.constant 0 : i32
    return %c0_i32, %c0_i32_0 : i32, i32
  }
  func.func @transform_1(%arg0: i32, %arg1: i32) -> (i32, i32) {
    %c0_i32 = arith.constant 0 : i32
    %c0_i32_0 = arith.constant 0 : i32
    %c0_i32_1 = arith.constant 0 : i32
    return %c0_i32, %c0_i32_0 : i32, i32
  }
  func.func @transform_2(%arg0: i32, %arg1: i32) -> (i32, i32) {
    %c0_i32 = arith.constant 0 : i32
    %c0_i32_0 = arith.constant 0 : i32
    %c0_i32_1 = arith.constant 0 : i32
    return %c0_i32, %c0_i32_0 : i32, i32
  }
  func.func @transform_3(%arg0: i32, %arg1: i32) -> (i32, i32) {
    %c0_i32 = arith.constant 0 : i32
    %c0_i32_0 = arith.constant 0 : i32
    %c0_i32_1 = arith.constant 0 : i32
    return %c0_i32, %c0_i32_0 : i32, i32
  }
  func.func @transform_4(%arg0: i32, %arg1: i32) -> (i32, i32, i32) {
    %c0_i32 = arith.constant 0 : i32
    %c0_i32_0 = arith.constant 0 : i32
    return %arg0, %c0_i32, %arg1 : i32, i32, i32
  }
  func.func @transform_5(%arg0: i32, %arg1: i32) -> (i32, i32, i32) {
    %c0_i32 = arith.constant 0 : i32
    %c0_i32_0 = arith.constant 0 : i32
    return %arg0, %c0_i32, %arg1 : i32, i32, i32
  }
}

</mosaic_0001>

<bundles_post_ra>
// kernel: tpu_custom_call.1
= control target key start
LH: loop header
LB: loop body
LE: loop exit
PB: predicated region body
PF: predicated region fallthrough
CT: control target
= control target key end

     0   :  { %s715_s0 = inlined_call_operand.vmem [shape: f32[4,32], index: 0, kind: input, shape index: {}]   ;;  %s716_s1 = inlined_call_operand.vmem [shape: f32[4,1], index: 1, kind: input, shape index: {}]   ;;  %s717_s2 = inlined_call_operand.vmem [shape: f32[1,4], index: 2, kind: input, shape index: {}]   ;;  %s718_s3 = inlined_call_operand.<no memory space> [shape: f32[1,1], index: 3, kind: input, shape index: {}]   ;;  %s719_s4 = inlined_call_operand.hbm [shape: f32[2,32,256], index: 4, kind: input, shape index: {}]   ;;  %s720_s5 = inlined_call_operand.hbm [shape: f32[2,32,256], index: 5, kind: output, shape index: {}]  }
   0x1   :  { %v10_v0 = vstv %s718_s3 }
   0x2   :  { %11 = vst [vmem:[#allocation2] sm:$0x1] %v10_v0 }
   0x3   :  { %12 = vsyncpa [#allocation4], 0 }
   0x4   :  { %13 = vsyncpa [#allocation5], 0  ;;  %s565_s20 = smov [#allocation3]   ;;  %s517_s24 = scalar_lea.hbm %s719_s4, 2048 }
   0x5   :  { %s27_s21 = sshll.u32 %s565_s20, 4  ;;  %p518_p0 = scmp.ne.s32.totalorder %s719_s4, %s517_s24  ;;  %s28_s21 = int_to_ptr.vmem [resolvable:$true] %s27_s21 }
   0x6   :  { %p521_p1 = scmp.lt.u32.totalorder %s517_s24, %s719_s4 }
   0x8   :  { %p523_p2 = pnand %p521_p1, %p518_p0 }
   0xa   :  { %526 = shalt.err (!%p523_p2)
}
   0xb   :  { %s527_s3 = scalar_lea.vmem %s28_s21, 2048  ;;  %p532_p4 = scmp.lt.s32.totalorder %s28_s21, %s28_s21 }
   0xc   :  { %p528_p3 = scmp.ne.s32.totalorder %s28_s21, %s527_s3  ;;  %p533_p5 = scmp.lt.s32.totalorder %s527_s3, %s527_s3 }
   0xe   :  { %p534_p6 = por %p533_p5, %p532_p4 }
  0x10   :  { %p535_p7 = pnand %p534_p6, %p528_p3 }
  0x12   :  { %538 = shalt.err (!%p535_p7)
}
  0x13   :  { %s566_s29 = smov 256   ;;  %s567_s30 = smov 16  }
  0x14   :  { %33 = dma.hbm_to_vmem [thread:$0]  %s719_s4, 2048, %s28_s21, [#allocation4], %s566_s29, %s566_s29, %s567_s30  }
  0x15   :  { %561 = dma.done.wait [#allocation4], 2048  }
  0x16   :  { %562 = vsyncadd [#allocation4], 4294965248  ;;  %v568_v1 = vmov 0.0   ;;  %v569_v2 = vmov 0   ;;  %v619_v3 = vld [vmem:[#allocation3 + $0x8] sm:$0xff]  ;;  %v621_v4 = vld [vmem:[#allocation3 + $0x18] sm:$0xff]  ;;  %v227_v54 = vlaneseq }
  0x17   :  { %123 = vmatprep.mubr.f32.mxu0 %v568_v1  ;;  %500 = vset.pattern.permute.xlu0 %v569_v2  ;;  %v623_v5 = vld [vmem:[#allocation3] sm:$0xff]  ;;  %v476_v6 = vpack.c.bf16 %v621_v4, %v619_v3  ;;  %v627_v7 = vld [vmem:[#allocation3 + $0x10] sm:$0xff]  ;;  %v629_v8 = vld [vmem:[#allocation3 + $0x28] sm:$0xff]  ;;  %vm55_vm0 = vcmask 261120   ;;  %vm137_vm1 = vcmask 1043456   ;;  %vm133_vm2 = vcmask 31744  }
  0x18   :  { %208 = vmatprep.mubr.f32.mxu1 %v568_v1  ;;  %v631_v9 = vld [vmem:[#allocation3 + $0x38] sm:$0xff]  ;;  %v478_v10 = vpack.c.bf16 %v627_v7, %v623_v5  ;;  %v637_v12 = vld [vmem:[#allocation3 + $0x20] sm:$0xff]  ;;  %v639_v13 = vld [vmem:[#allocation3 + $0x30] sm:$0xff]  ;;  %v228_v56 = vshrl.u32 %v227_v54, 7  ;;  %s570_s11 = smov [#allocation6]  }
  0x19   :  { %v480_v11 = vpack.c.bf16 %v631_v9, %v629_v8  ;;  %477 = vmatprep.subr.bf16.mxu0 %v476_v6  ;;  %v38_v14 = vld [vmem:[%s716_s1] sm:$0xf]  ;;  %v482_v15 = vpack.c.bf16 %v639_v13, %v637_v12  ;;  %v650_v22 = vld [vmem:[#allocation3 + $0x48] sm:$0xff]  ;;  %v656_v26 = vld [vmem:[#allocation3 + $0x50] sm:$0xff]  ;;  %s452_s12 = sshll.u32 %s570_s11, 4  ;;  %s453_s12 = int_to_ptr.vmem [resolvable:$true] %s452_s12 }
  0x1a   :  { %479 = vmatpush1.bf16.msra.mxu0 %v478_v10  ;;  %52 = vperm.xlu0 %500, %v38_v14   ;;  %v37_v16 = vld [vmem:[%s715_s0] sm:$0xf]  ;;  %v658_v27 = vld [vmem:[#allocation3 + $0x68] sm:$0xff]  ;;  %v674_v36 = vld [vmem:[#allocation3 + $0x70] sm:$0xff]  ;;  %v229_v57 = vsub.s32 0, %v228_v56  ;;  %s539_s13 = scalar_lea.vmem %s453_s12, 2048  ;;  %p544_p9 = scmp.lt.s32.totalorder %s453_s12, %s453_s12 }
  0x1b   :  { %481 = vmatprep.subr.bf16.mxu0 %v480_v11  ;;  %v40_v17 = vld [vmem:[#allocation2] sm:$0x1]  ;;  %v654_v25 = vld [vmem:[#allocation3 + $0x40] sm:$0xff]  ;;  %p540_p8 = scmp.ne.s32.totalorder %s453_s12, %s539_s13  ;;  %p545_p10 = scmp.lt.s32.totalorder %s539_s13, %s539_s13 }
  0x1c   :  { %492 = vpush %v40_v17  ;;  %v652_v23 = vld [vmem:[#allocation3 + $0x58] sm:$0xff]  ;;  %v486_v33 = vpack.c.bf16 %v656_v26, %v654_v25  ;;  %v672_v35 = vld [vmem:[#allocation3 + $0x60] sm:$0xff] }
  0x1d   :  { %v660_v28 = vld [vmem:[#allocation3 + $0x78] sm:$0xff]  ;;  %v484_v30 = vpack.c.bf16 %v652_v23, %v650_v22  ;;  %v490_v37 = vpack.c.bf16 %v674_v36, %v672_v35  ;;  %p546_p11 = por %p545_p10, %p544_p9 }
  0x1e   :  { %483 = vmatpush1.bf16.msra.mxu0 %v482_v15  ;;  %v39_v32 = vld [vmem:[%s717_s2] sm:$0x1]  ;;  %v488_v34 = vpack.c.bf16 %v660_v28, %v658_v27 }
  0x1f   :  { %p547_p12 = pnand %p546_p11, %p540_p8 }
  0x21   :  { %464 = vmatmul.mubr.msk.f32.vlgmr.msra.gmra.mrb[0].mxu0 %vm55_vm0, %v37_v16 }
  0x22   :  { %403 = vmatprep.mubr.f32.mxu0 %v568_v1 }
  0x4d   :  { %s493_s2 = spop %492 }
  0x4e   :  { %v132_v38 = vstv %s493_s2 }
  0x99   :  { %v53_v18 = vpop.permute.xlu0 %52 }
  0xf4   :  { %v125_v19 = vpop.f32.mrb[0].mxu0 }
  0xf5   :  { %v126_v20 = vadd.f32 %v125_v19, %v53_v18  ;;  %v127_v21 = vpop.f32.mrb[1].mxu0 }
  0xf6   :  { %v128_v24 = vadd.f32 %v127_v21, %v53_v18 }
  0xf7   :  { %v130_v31 = vmax.f32 %v126_v20, 0.0 }
  0xf8   :  { %v131_v29 = vmax.f32 %v128_v24, 0.0 }
  0xfa   :  { %465 = vmatprep.subr.msk.mxu1 %vm137_vm1, %v131_v29 }
  0xfb   :  { %466 = vmatpush1.msk.msra.mxu1 %vm137_vm1, %v130_v31 }
  0xfc   :  { %467 = vmatmul.mubr.msk.f32.vlgmr.msra.gmra.mrb[0].mxu1 %vm133_vm2, %v39_v32  ;;  %485 = vmatprep.subr.bf16.mxu1 %v484_v30 }
  0xfd   :  { %487 = vmatpush1.bf16.msra.mxu1 %v486_v33  ;;  %324 = vmatprep.mubr.f32.mxu1 %v568_v1 }
  0xfe   :  { %489 = vmatprep.subr.bf16.mxu1 %v488_v34 }
 0x101   :  { %491 = vmatpush1.bf16.msra.mxu1 %v490_v37 }
 0x104   :  { %470 = vmatmul.mubr.msk.f32.vlgmr.msra.gmra.mrb[2].mxu1 %vm55_vm0, %v37_v16 }
 0x1cf   :  { %v210_v39 = vpop.f32.mrb[0].mxu1 }
 0x1d0   :  { %v211_v40 = vadd.f32 %v210_v39, %v132_v38  ;;  %v212_v41 = vpop.f32.mrb[1].mxu1 }
 0x1d1   :  { %v213_v42 = vadd.f32 %v212_v41, %v132_v38 }
 0x1d2   :  { %v468_v43 = vmul.f32 -1.442695, %v211_v40 }
 0x1d3   :  { %v469_v44 = vmul.f32 -1.442695, %v213_v42 }
 0x1d4   :  { %501 = vpow2.f32 %v468_v43 }
 0x1d5   :  { %503 = vpow2.f32 %v469_v44 }
 0x1d7   :  { %v326_v45 = vpop.f32.mrb[2].mxu1 }
 0x1d8   :  { %v327_v46 = vadd.f32 %v326_v45, %v53_v18  ;;  %v328_v47 = vpop.f32.mrb[3].mxu1 }
 0x1d9   :  { %v329_v48 = vadd.f32 %v328_v47, %v53_v18 }
 0x1da   :  { %v331_v50 = vmax.f32 %v327_v46, 0.0 }
 0x1db   :  { %v332_v49 = vmax.f32 %v329_v48, 0.0 }
 0x1dd   :  { %471 = vmatprep.subr.msk.mxu0 %vm137_vm1, %v332_v49 }
 0x1de   :  { %v502_v51 = vpop.eup %501  ;;  %472 = vmatpush1.msk.msra.mxu0 %vm137_vm1, %v331_v50 }
 0x1df   :  { %v504_v52 = vpop.eup %503  ;;  %v221_v53 = vadd.f32 1.0, %v502_v51  ;;  %473 = vmatmul.mubr.msk.f32.vlgmr.msra.gmra.mrb[2].mxu0 %vm133_vm2, %v39_v32 }
 0x1e0   :  { %v222_v55 = vadd.f32 1.0, %v504_v52 }
 0x1e1   :  { %505 = vrcp.f32 %v221_v53 }
 0x1e2   :  { %507 = vrcp.f32 %v222_v55 }
 0x1eb   :  { %v506_v58 = vpop.eup %505 }
 0x1ec   :  { %v508_v59 = vpop.eup %507  ;;  %v230_v60 = vrot.slane %v506_v58, %v229_v57 }
 0x1ed   :  { %v234_v61 = vrot.slane %v508_v59, %v229_v57 }
 0x1ee   :  { %v235_v62 = vmul.f32 %v230_v60, %v623_v5  ;;  %v237_v63 = vmul.f32 %v230_v60, %v627_v7  ;;  %v239_v0 = vmul.f32 %v230_v60, %v637_v12  ;;  %v241_v1 = vmul.f32 %v230_v60, %v639_v13 }
 0x1ef   :  { %v236_v2 = vmul.f32 %v234_v61, %v619_v3  ;;  %v238_v6 = vmul.f32 %v234_v61, %v621_v4  ;;  %v240_v10 = vmul.f32 %v234_v61, %v629_v8  ;;  %v242_v11 = vmul.f32 %v234_v61, %v631_v9 }
 0x1f0   :  { %243 = vst [vmem:[#allocation6] sm:$0xff] %v235_v62  ;;  %245 = vst [vmem:[#allocation6 + $0x10] sm:$0xff] %v237_v63 }
 0x1f1   :  { %247 = vst [vmem:[#allocation6 + $0x20] sm:$0xff] %v239_v0  ;;  %249 = vst [vmem:[#allocation6 + $0x30] sm:$0xff] %v241_v1 }
 0x1f2   :  { %244 = vst [vmem:[#allocation6 + $0x8] sm:$0xff] %v236_v2  ;;  %246 = vst [vmem:[#allocation6 + $0x18] sm:$0xff] %v238_v6 }
 0x1f3   :  { %248 = vst [vmem:[#allocation6 + $0x28] sm:$0xff] %v240_v10  ;;  %250 = vst [vmem:[#allocation6 + $0x38] sm:$0xff] %v242_v11 }
 0x2b2   :  { %v405_v5 = vpop.f32.mrb[2].mxu0 }
 0x2b3   :  { %v406_v7 = vadd.f32 %v405_v5, %v132_v38  ;;  %v407_v12 = vpop.f32.mrb[3].mxu0 }
 0x2b4   :  { %v408_v13 = vadd.f32 %v407_v12, %v132_v38 }
 0x2b5   :  { %v474_v14 = vmul.f32 -1.442695, %v406_v7 }
 0x2b6   :  { %v475_v3 = vmul.f32 -1.442695, %v408_v13 }
 0x2b7   :  { %509 = vpow2.f32 %v474_v14 }
 0x2b8   :  { %511 = vpow2.f32 %v475_v3 }
 0x2c1   :  { %v510_v4 = vpop.eup %509 }
 0x2c2   :  { %v512_v8 = vpop.eup %511  ;;  %v416_v15 = vadd.f32 1.0, %v510_v4 }
 0x2c3   :  { %v417_v9 = vadd.f32 1.0, %v512_v8 }
 0x2c4   :  { %513 = vrcp.f32 %v416_v15 }
 0x2c5   :  { %515 = vrcp.f32 %v417_v9 }
 0x2ce   :  { %v514_v16 = vpop.eup %513 }
 0x2cf   :  { %v516_v17 = vpop.eup %515  ;;  %v425_v18 = vrot.slane %v514_v16, %v229_v57 }
 0x2d0   :  { %v429_v19 = vrot.slane %v516_v17, %v229_v57 }
 0x2d1   :  { %v430_v20 = vmul.f32 %v425_v18, %v654_v25  ;;  %v432_v21 = vmul.f32 %v425_v18, %v656_v26  ;;  %v434_v24 = vmul.f32 %v425_v18, %v672_v35  ;;  %v436_v29 = vmul.f32 %v425_v18, %v674_v36 }
 0x2d2   :  { %v431_v30 = vmul.f32 %v429_v19, %v650_v22  ;;  %v433_v31 = vmul.f32 %v429_v19, %v652_v23  ;;  %v435_v32 = vmul.f32 %v429_v19, %v658_v27  ;;  %v437_v33 = vmul.f32 %v429_v19, %v660_v28 }
 0x2d3   :  { %439 = vst [vmem:[#allocation6 + $0x40] sm:$0xff] %v430_v20  ;;  %441 = vst [vmem:[#allocation6 + $0x50] sm:$0xff] %v432_v21 }
 0x2d4   :  { %443 = vst [vmem:[#allocation6 + $0x60] sm:$0xff] %v434_v24  ;;  %445 = vst [vmem:[#allocation6 + $0x70] sm:$0xff] %v436_v29 }
 0x2d5   :  { %440 = vst [vmem:[#allocation6 + $0x48] sm:$0xff] %v431_v30  ;;  %442 = vst [vmem:[#allocation6 + $0x58] sm:$0xff] %v433_v31 }
 0x2d6   :  { %444 = vst [vmem:[#allocation6 + $0x68] sm:$0xff] %v435_v32  ;;  %446 = vst [vmem:[#allocation6 + $0x78] sm:$0xff] %v437_v33 }
 0x2d7   :  { %550 = shalt.err (!%p547_p12)
}
 0x2d8   :  { %s551_s16 = scalar_lea.hbm %s720_s5, 2048 }
 0x2d9   :  { %p552_p13 = scmp.ne.s32.totalorder %s720_s5, %s551_s16  ;;  %p555_p0 = scmp.lt.u32.totalorder %s551_s16, %s720_s5 }
 0x2db   :  { %p557_p1 = pnand %p555_p0, %p552_p13 }
 0x2dd   :  { %560 = shalt.err (!%p557_p1)
}
 0x2de   :  { %458 = dma.vmem_to_hbm [thread:$0]  %s453_s12, 2048, %s720_s5, [#allocation5], %s566_s29, %s566_s29, %s567_s30  }
 0x2df   :  { %563 = dma.done.wait [#allocation5], 2048  }
 0x2e0   :  { %564 = vsyncadd [#allocation5], 4294965248 }
 0x2e1   :  { %462 = vsyncpa [#allocation4], 1 }
 0x2e2   :  { %463 = vsyncpa [#allocation5], 1 }

</bundles_post_ra>
